<compile_context>
chip_gen: v5e
topology: v5e:2x2
jax: 0.10.0
libtpu: 0.0.40
codegen_flags: <defaults>
</compile_context>

<pallas_src>
from typing import NamedTuple

import jax
import jax.numpy as jnp
from jax.experimental import pallas as pl
from jax.experimental.pallas import tpu as pltpu


def _round_up(x, m):
    return (x + m - 1) // m * m


def _cdiv(a, b):
    return -(-a // b)


def _device_prefers_256():
    """v6e / v7x have 2x256x256 MXUs; v5e (and older) are 128-wide."""
    try:
        kind = jax.devices()[0].device_kind.lower()
    except Exception:
        return False
    return any(t in kind for t in ("v6", "v7", "7x"))


def _vmem_capacity_bytes():
    try:
        info = pltpu.get_tpu_info()
        cap = getattr(info, "vmem_capacity_bytes", None)
        if cap:
            return int(cap)
    except Exception:
        pass
    return 128 << 20  # v5e / v6e physical VMEM as a conservative fallback


class FFNParams(NamedTuple):
    w1: jax.Array    # (d_pad, i_pad) bf16
    b1: jax.Array    # (1, i_pad)     f32
    w2: jax.Array    # (i_pad, d_pad) bf16
    b2: jax.Array    # (1, d_pad)     f32
    dim: int
    inner: int
    d_pad: int
    i_pad: int
    tk: int          # hidden-dim chunk processed per grid step


def prepare_params(w1, b1, w2, b2, *, tk=512, feat_align=None):
    """One-time weight preparation: cast to bf16 and zero-pad to lane-dense,
    MXU-friendly shapes.  Zero padding is exact: padded x cols are 0, padded W1
    rows/cols are 0 -> padded hidden units are ReLU(0+0)=0 -> contribute 0 through
    the zero rows of padded W2; padded output cols are sliced away."""
    dim, inner = w1.shape
    if feat_align is None:
        feat_align = 256 if _device_prefers_256() else 128
    d_align = feat_align if dim >= feat_align else 128
    i_align = feat_align if inner >= feat_align else 128
    d_pad = _round_up(dim, d_align)
    i_pad = _round_up(inner, i_align)
    tk = _round_up(min(tk, i_pad), i_align)
    i_pad = _round_up(i_pad, tk)                  # hidden grid axis divides evenly

    w1_p = jnp.pad(w1.astype(jnp.bfloat16), ((0, d_pad - dim), (0, i_pad - inner)))
    b1_p = jnp.pad(b1.astype(jnp.float32).reshape(1, -1), ((0, 0), (0, i_pad - inner)))
    w2_p = jnp.pad(w2.astype(jnp.bfloat16), ((0, i_pad - inner), (0, d_pad - dim)))
    b2_p = jnp.pad(b2.astype(jnp.float32).reshape(1, -1), ((0, 0), (0, d_pad - dim)))
    return FFNParams(w1_p, b1_p, w2_p, b2_p, dim, inner, d_pad, i_pad, tk)


def ffn_kernel(x_ref, w1_ref, b1_ref, w2_ref, b2_ref, o_ref, acc_ref):
    # x_ref:  (tm, d_pad) x.dtype   w1_ref: (d_pad, tk) bf16   b1_ref: (1, tk) f32
    # w2_ref: (tk, d_pad) bf16      b2_ref: (1, d_pad)  f32
    # o_ref:  (tm, d_pad) x.dtype   acc_ref: (tm, d_pad) f32 scratch
    k = pl.program_id(1)

    @pl.when(k == 0)
    def _():
        acc_ref[...] = jnp.zeros_like(acc_ref)

    x = x_ref[...].astype(jnp.bfloat16)             # cast on the VPU, hidden under MXU
    h = jnp.dot(x, w1_ref[...], preferred_element_type=jnp.float32)
    h = jnp.maximum(h + b1_ref[...], 0.0)           # bias + ReLU in f32
    # Dropout in eval/inference mode is identity.
    h = h.astype(jnp.bfloat16)                      # single downcast, after ReLU
    acc_ref[...] += jnp.dot(h, w2_ref[...], preferred_element_type=jnp.float32)

    @pl.when(k == pl.num_programs(1) - 1)
    def _():
        o_ref[...] = (acc_ref[...] + b2_ref[...]).astype(o_ref.dtype)


def feed_forward(x, params: FFNParams, *, tm=None, training=False, dropout_p=0.1):
    """x: (N, dim).  params: from prepare_params()."""
    if training and dropout_p > 0.0:
        # TODO(synk): training-mode stochastic dropout via pltpu.prng_seed/prng_random_bits.
        raise NotImplementedError("Only eval-mode (dropout = identity) is implemented.")

    N, dim = x.shape
    assert dim == params.dim, f"dim mismatch: x has {dim}, params built for {params.dim}"
    d_pad, i_pad, tk = params.d_pad, params.i_pad, params.tk

    # Row tile: 256 on v6e/v7x (256-row MXU), 128 on v5e (128-row MXU, 1 vst slot).
    if tm is None:
        tm = 256 if _device_prefers_256() else 128
    tm_eff = min(tm, _round_up(N, 16))              # bf16-packed sublane multiple
    # Keep >=2 row tiles when possible so the "parallel" axis shards across v7x's 2 TCs.
    if N > 16 and _cdiv(N, tm_eff) < 2:
        tm_eff = _round_up(_cdiv(N, 2), 16)
    n_pad = _round_up(N, tm_eff)

    # Pad activations only when needed (row remainder / unaligned feature dim).
    x_p = x
    if n_pad != N or d_pad != dim:
        x_p = jnp.pad(x, ((0, n_pad - N), (0, d_pad - dim)))

    n_row_tiles = n_pad // tm_eff
    n_k = i_pad // tk
    grid = (n_row_tiles, n_k)

    out_dtype = x.dtype
    out_bytes = jnp.dtype(out_dtype).itemsize
    x_bytes = jnp.dtype(x.dtype).itemsize

    # VMEM footprint: double-buffered streamed blocks + resident f32 accumulator.
    est = (2 * tm_eff * d_pad * x_bytes             # x tiles
           + 2 * d_pad * tk * 2                     # W1 chunks (bf16)
           + 2 * tk * d_pad * 2                     # W2 chunks (bf16)
           + 2 * 8 * tk * 4                         # b1 chunks (sublane-padded)
           + 2 * 8 * d_pad * 4                      # b2
           + 2 * tm_eff * d_pad * out_bytes         # out tiles
           + tm_eff * d_pad * 4                     # accumulator scratch
           + tm_eff * tk * (4 + 2))                 # hidden h (f32 + bf16 copy)
    vmem_limit = int(min(0.85 * _vmem_capacity_bytes(), max(2 * est, 32 << 20)))

    flops = 4 * n_pad * d_pad * i_pad               # two matmuls, 2 flops/MAC
    bytes_accessed = (n_pad * d_pad * (x_bytes + out_bytes)
                      + n_row_tiles * 2 * d_pad * i_pad * 2
                      + (i_pad + d_pad) * 4)

    out_p = pl.pallas_call(
        ffn_kernel,
        out_shape=jax.ShapeDtypeStruct((n_pad, d_pad), out_dtype),
        grid_spec=pltpu.PrefetchScalarGridSpec(
            num_scalar_prefetch=0,
            grid=grid,
            in_specs=[
                pl.BlockSpec((tm_eff, d_pad), lambda i, k: (i, 0)),   # x row tile (reused over k)
                pl.BlockSpec((d_pad, tk),     lambda i, k: (0, k)),   # W1 hidden chunk
                pl.BlockSpec((1, tk),         lambda i, k: (0, k)),   # b1 hidden chunk
                pl.BlockSpec((tk, d_pad),     lambda i, k: (k, 0)),   # W2 hidden chunk
                pl.BlockSpec((1, d_pad),      lambda i, k: (0, 0)),   # b2
            ],
            out_specs=pl.BlockSpec((tm_eff, d_pad), lambda i, k: (i, 0)),
            scratch_shapes=[pltpu.VMEM((tm_eff, d_pad), jnp.float32)],
        ),
        compiler_params=pltpu.CompilerParams(
            dimension_semantics=("parallel", "arbitrary"),
            vmem_limit_bytes=vmem_limit),
        cost_estimate=pl.CostEstimate(
            flops=flops, transcendentals=0, bytes_accessed=bytes_accessed),
    )(x_p, params.w1, params.b1, params.w2, params.b2)

    return out_p[:N, :dim]


def init_params(key, dim, mult=4, dtype=jnp.float32):
    """PyTorch-style Linear init: U(-1/sqrt(fan_in), +1/sqrt(fan_in))."""
    inner = int(dim * mult)
    k1, k2, k3, k4 = jax.random.split(key, 4)
    bound1 = 1.0 / (dim ** 0.5)
    bound2 = 1.0 / (inner ** 0.5)
    # Stored as (in_features, out_features) == transpose of PyTorch's weight.
    w1 = jax.random.uniform(k1, (dim, inner), dtype, -bound1, bound1)
    b1 = jax.random.uniform(k2, (1, inner), dtype, -bound1, bound1)
    w2 = jax.random.uniform(k3, (inner, dim), dtype, -bound2, bound2)
    b2 = jax.random.uniform(k4, (1, dim), dtype, -bound2, bound2)
    return w1, b1, w2, b2


if __name__ == "__main__":
    key = jax.random.PRNGKey(0)
    kx, kp = jax.random.split(key)

    batch, seq, dim, mult = 2, 8, 32, 4        # small shapes consistent with the module
    x = jax.random.normal(kx, (batch, seq, dim), jnp.float32)
    w1, b1, w2, b2 = init_params(kp, dim, mult)

    # One-time weight preparation (hoisted out of the per-call path).
    params = prepare_params(w1, b1, w2, b2)

    # Flatten leading dims -> (rows, dim); kernel runs the fused MLP hot path.
    x2d = x.reshape(batch * seq, dim)
    out2d = feed_forward(x2d, params)
    out = out2d.reshape(batch, seq, dim)
    jax.block_until_ready(out)

    # Reference in plain f32 JAX (dropout = identity in eval mode). Kernel uses bf16
    # MXU inputs with f32 accumulation, so tolerance is loosened accordingly
    # (~1e-2-level deviation from an f32 PyTorch FeedForward is expected).
    ref = jnp.maximum(x2d @ w1 + b1, 0.0) @ w2 + b2
    assert jnp.allclose(out2d, ref, atol=5e-2, rtol=5e-2), (
        "max abs err = %f" % float(jnp.max(jnp.abs(out2d - ref))))

    print("KERNEL_OK")
</pallas_src>

<mosaic_0001>
module attributes {stable_mosaic.version = 11 : i64} {
  func.func @ffn_kernel(%arg0: i32, %arg1: i32, %arg2: memref<16x128xf32, #tpu.memory_space<vmem>>, %arg3: memref<128x128xbf16, #tpu.memory_space<vmem>>, %arg4: memref<1x128xf32, #tpu.memory_space<vmem>>, %arg5: memref<128x128xbf16, #tpu.memory_space<vmem>>, %arg6: memref<1x128xf32, #tpu.memory_space<vmem>>, %arg7: memref<16x128xf32, #tpu.memory_space<vmem>>, %arg8: memref<16x128xf32, #tpu.memory_space<vmem>>) attributes {dimension_semantics = [#tpu.dimension_semantics<parallel>, #tpu.dimension_semantics<arbitrary>], iteration_bounds = array<i64: 1, 1>, scalar_prefetch = 0 : i64, scratch_operands = 1 : i64, tpu.core_type = #tpu.core_type<tc>, window_params = [{transform_indices = @transform_0, window_bounds = array<i64: 16, 128>}, {transform_indices = @transform_1, window_bounds = array<i64: 128, 128>}, {transform_indices = @transform_2, window_bounds = array<i64: 1, 128>}, {transform_indices = @transform_3, window_bounds = array<i64: 128, 128>}, {pipeline_mode = #tpu.pipeline_mode<synchronous>, transform_indices = @transform_4, window_bounds = array<i64: 1, 128>}, {transform_indices = @transform_5, window_bounds = array<i64: 16, 128>}]} {
    %c0_i32 = arith.constant 0 : i32
    %0 = arith.cmpi eq, %arg1, %c0_i32 : i32
    %1 = arith.extui %0 : i1 to i32
    %c0_i32_0 = arith.constant 0 : i32
    %2 = arith.cmpi ne, %1, %c0_i32_0 : i32
    scf.if %2 {
      %cst_16 = arith.constant 0.000000e+00 : f32
      %21 = vector.broadcast %cst_16 : f32 to vector<16x128xf32>
      %c0_17 = arith.constant 0 : index
      %c0_18 = arith.constant 0 : index
      %22 = vector.load %arg8[%c0_17, %c0_18] : memref<16x128xf32, #tpu.memory_space<vmem>>, vector<16x128xf32>
      tpu.vector_store %arg8[%c0_17, %c0_18], %21 {strides = array<i32>} : memref<16x128xf32, #tpu.memory_space<vmem>>, vector<16x128xf32>,
    } else {
    }
    %c0 = arith.constant 0 : index
    %c0_1 = arith.constant 0 : index
    %3 = vector.load %arg2[%c0, %c0_1] : memref<16x128xf32, #tpu.memory_space<vmem>>, vector<16x128xf32>
    %4 = arith.truncf %3 : vector<16x128xf32> to vector<16x128xbf16>
    %c0_2 = arith.constant 0 : index
    %c0_3 = arith.constant 0 : index
    %5 = vector.load %arg3[%c0_2, %c0_3] : memref<128x128xbf16, #tpu.memory_space<vmem>>, vector<128x128xbf16>
    %cst = arith.constant dense<0.000000e+00> : vector<16x128xf32>
    %6 = tpu.matmul %4, %5, %cst {dimension_numbers = #tpu.dot_dimension_numbers<[1], [0], [0], [1], [0, 0, 1, 1], [], []>} : vector<16x128xbf16>, vector<128x128xbf16>, vector<16x128xf32> -> vector<16x128xf32>
    %c0_4 = arith.constant 0 : index
    %c0_5 = arith.constant 0 : index
    %7 = vector.load %arg4[%c0_4, %c0_5] : memref<1x128xf32, #tpu.memory_space<vmem>>, vector<1x128xf32>
    %8 = vector.broadcast %7 : vector<1x128xf32> to vector<16x128xf32>
    %9 = arith.addf %6, %8 : vector<16x128xf32>
    %cst_6 = arith.constant 0.000000e+00 : f32
    %10 = vector.broadcast %cst_6 : f32 to vector<16x128xf32>
    %11 = arith.maximumf %9, %10 : vector<16x128xf32>
    %12 = arith.truncf %11 : vector<16x128xf32> to vector<16x128xbf16>
    %c0_7 = arith.constant 0 : index
    %c0_8 = arith.constant 0 : index
    %13 = vector.load %arg8[%c0_7, %c0_8] : memref<16x128xf32, #tpu.memory_space<vmem>>, vector<16x128xf32>
    %c0_9 = arith.constant 0 : index
    %c0_10 = arith.constant 0 : index
    %14 = vector.load %arg5[%c0_9, %c0_10] : memref<128x128xbf16, #tpu.memory_space<vmem>>, vector<128x128xbf16>
    %cst_11 = arith.constant dense<0.000000e+00> : vector<16x128xf32>
    %15 = tpu.matmul %12, %14, %cst_11 {dimension_numbers = #tpu.dot_dimension_numbers<[1], [0], [0], [1], [0, 0, 1, 1], [], []>} : vector<16x128xbf16>, vector<128x128xbf16>, vector<16x128xf32> -> vector<16x128xf32>
    %16 = arith.addf %13, %15 : vector<16x128xf32>
    %c0_12 = arith.constant 0 : index
    %c0_13 = arith.constant 0 : index
    %17 = vector.load %arg8[%c0_12, %c0_13] : memref<16x128xf32, #tpu.memory_space<vmem>>, vector<16x128xf32>
    tpu.vector_store %arg8[%c0_12, %c0_13], %16 {strides = array<i32>} : memref<16x128xf32, #tpu.memory_space<vmem>>, vector<16x128xf32>,
    %c0_i32_14 = arith.constant 0 : i32
    %18 = arith.cmpi eq, %arg1, %c0_i32_14 : i32
    %19 = arith.extui %18 : i1 to i32
    %c0_i32_15 = arith.constant 0 : i32
    %20 = arith.cmpi ne, %19, %c0_i32_15 : i32
    scf.if %20 {
      %c0_16 = arith.constant 0 : index
      %c0_17 = arith.constant 0 : index
      %21 = vector.load %arg8[%c0_16, %c0_17] : memref<16x128xf32, #tpu.memory_space<vmem>>, vector<16x128xf32>
      %c0_18 = arith.constant 0 : index
      %c0_19 = arith.constant 0 : index
      %22 = vector.load %arg6[%c0_18, %c0_19] : memref<1x128xf32, #tpu.memory_space<vmem>>, vector<1x128xf32>
      %23 = vector.broadcast %22 : vector<1x128xf32> to vector<16x128xf32>
      %24 = arith.addf %21, %23 : vector<16x128xf32>
      %c0_20 = arith.constant 0 : index
      %c0_21 = arith.constant 0 : index
      %25 = vector.load %arg7[%c0_20, %c0_21] : memref<16x128xf32, #tpu.memory_space<vmem>>, vector<16x128xf32>
      tpu.vector_store %arg7[%c0_20, %c0_21], %24 {strides = array<i32>} : memref<16x128xf32, #tpu.memory_space<vmem>>, vector<16x128xf32>,
    } else {
    }
    return
  }
  func.func @transform_0(%arg0: i32, %arg1: i32) -> (i32, i32) {
    %c0_i32 = arith.constant 0 : i32
    %c0_i32_0 = arith.constant 0 : i32
    return %arg0, %c0_i32 : i32, i32
  }
  func.func @transform_1(%arg0: i32, %arg1: i32) -> (i32, i32) {
    %c0_i32 = arith.constant 0 : i32
    %c0_i32_0 = arith.constant 0 : i32
    return %c0_i32, %arg1 : i32, i32
  }
  func.func @transform_2(%arg0: i32, %arg1: i32) -> (i32, i32) {
    %c0_i32 = arith.constant 0 : i32
    %c0_i32_0 = arith.constant 0 : i32
    return %c0_i32, %arg1 : i32, i32
  }
  func.func @transform_3(%arg0: i32, %arg1: i32) -> (i32, i32) {
    %c0_i32 = arith.constant 0 : i32
    %c0_i32_0 = arith.constant 0 : i32
    return %arg1, %c0_i32 : i32, i32
  }
  func.func @transform_4(%arg0: i32, %arg1: i32) -> (i32, i32) {
    %c0_i32 = arith.constant 0 : i32
    %c0_i32_0 = arith.constant 0 : i32
    %c0_i32_1 = arith.constant 0 : i32
    return %c0_i32, %c0_i32_0 : i32, i32
  }
  func.func @transform_5(%arg0: i32, %arg1: i32) -> (i32, i32) {
    %c0_i32 = arith.constant 0 : i32
    %c0_i32_0 = arith.constant 0 : i32
    return %arg0, %c0_i32 : i32, i32
  }
}

</mosaic_0001>

<bundles_post_ra>
// kernel: tpu_custom_call.1
= control target key start
LH: loop header
LB: loop body
LE: loop exit
PB: predicated region body
PF: predicated region fallthrough
CT: control target
= control target key end

     0   :  { %10 = vsyncpa [#allocation4], 0  ;;  %s533_s0 = inlined_call_operand.hbm [shape: f32[16,128], index: 0, kind: input, shape index: {}]   ;;  %s534_s1 = inlined_call_operand.hbm [shape: bf16[128,128], index: 1, kind: input, shape index: {}]   ;;  %s535_s2 = inlined_call_operand.vmem [shape: f32[1,128], index: 2, kind: input, shape index: {}]   ;;  %s536_s3 = inlined_call_operand.hbm [shape: bf16[128,128], index: 3, kind: input, shape index: {}]   ;;  %s537_s4 = inlined_call_operand.vmem [shape: f32[1,128], index: 4, kind: input, shape index: {}]   ;;  %s538_s5 = inlined_call_operand.hbm [shape: f32[16,128], index: 5, kind: output, shape index: {}]  }
   0x1   :  { %11 = vsyncpa [#allocation7], 0  ;;  %s30_s20 = sshll.u32 %s534_s1, 4  ;;  %s31_s20 = int_to_ptr.hbm [resolvable:$true] %s30_s20 }
   0x2   :  { %12 = vsyncpa [#allocation5], 0  ;;  %s471_s21 = smov [#allocation6]   ;;  %s17_s25 = sshll.u32 %s533_s0, 4  ;;  %s18_s25 = int_to_ptr.hbm [resolvable:$true] %s17_s25 }
   0x3   :  { %s32_s22 = sshll.u32 %s471_s21, 4  ;;  %s472_s26 = smov 64   ;;  %s33_s22 = int_to_ptr.vmem [resolvable:$true] %s32_s22 }
   0x4   :  { %s473_s27 = smov 4   ;;  %s474_s28 = smov [#allocation3]  }
   0x5   :  { %38 = dma.hbm_to_vmem [thread:$0]  %s31_s20, 1024, %s33_s22, [#allocation7], %s472_s26, %s472_s26, %s473_s27  }
   0x6   :  { %s19_s29 = sshll.u32 %s474_s28, 4  ;;  %s475_s30 = smov 128   ;;  %s20_s29 = int_to_ptr.vmem [resolvable:$true] %s19_s29 }
   0x7   :  { %s476_s6 = smov 8   ;;  %s45_s8 = sshll.u32 %s536_s3, 4  ;;  %s46_s8 = int_to_ptr.hbm [resolvable:$true] %s45_s8 }
   0x8   :  { %25 = dma.hbm_to_vmem [thread:$0]  %s18_s25, 256, %s20_s29, [#allocation4], %s475_s30, %s475_s30, %s476_s6  }
   0x9   :  { %s477_s9 = smov [#allocation8]  }
   0xa   :  { %s47_s0 = sshll.u32 %s477_s9, 4  ;;  %s48_s0 = int_to_ptr.vmem [resolvable:$true] %s47_s0 }
   0xb   :  { %53 = dma.hbm_to_vmem [thread:$0]  %s46_s8, 1024, %s48_s0, [#allocation7], %s472_s26, %s472_s26, %s473_s27  }
   0xc   :  { %465 = dma.done.wait [#allocation4], 256  }
   0xd   :  { %466 = vsyncadd [#allocation4], 4294967040 }
   0xe   :  { %467 = dma.done.wait [#allocation7], 2048  }
   0xf   :  { %468 = vsyncadd [#allocation7], 4294965248  ;;  %v350_v0 = vld [vmem:[#allocation6 + $0x38] sm:$0xff]  ;;  %v349_v1 = vld [vmem:[#allocation6 + $0x30] sm:$0xff]  ;;  %s478_s13 = smov [#allocation9]  }
  0x10   :  { %145 = vmatpush.bf16.msra.mxu0 %v350_v0  ;;  %v358_v2 = vld [vmem:[#allocation8 + $0x38] sm:$0xff]  ;;  %v357_v3 = vld [vmem:[#allocation8 + $0x30] sm:$0xff]  ;;  %v348_v4 = vld [vmem:[#allocation6 + $0x28] sm:$0xff]  ;;  %s263_s14 = sshll.u32 %s478_s13, 4  ;;  %s264_s14 = int_to_ptr.vmem [resolvable:$true] %s263_s14 }
  0x11   :  { %228 = vmatpush.bf16.msra.mxu1 %v358_v2  ;;  %v356_v5 = vld [vmem:[#allocation8 + $0x28] sm:$0xff]  ;;  %v347_v6 = vld [vmem:[#allocation6 + $0x20] sm:$0xff]  ;;  %v346_v8 = vld [vmem:[#allocation6 + $0x18] sm:$0xff] }
  0x12   :  { %v355_v7 = vld [vmem:[#allocation8 + $0x20] sm:$0xff]  ;;  %v345_v9 = vld [vmem:[#allocation6 + $0x10] sm:$0xff]  ;;  %v344_v10 = vld [vmem:[#allocation6 + $0x8] sm:$0xff] }
  0x13   :  { %v343_v11 = vld [vmem:[#allocation6] sm:$0xff]  ;;  %v74_v12 = vld [vmem:[#allocation3] sm:$0xff]  ;;  %v75_v13 = vld [vmem:[#allocation3 + $0x8] sm:$0xff] }
  0x14   :  { %146 = vmatpush.bf16.msra.mxu0 %v349_v1  ;;  %v76_v14 = vpack.c.bf16 %v75_v13, %v74_v12  ;;  %v354_v15 = vld [vmem:[#allocation8 + $0x18] sm:$0xff]  ;;  %v353_v16 = vld [vmem:[#allocation8 + $0x10] sm:$0xff]  ;;  %v352_v17 = vld [vmem:[#allocation8 + $0x8] sm:$0xff] }
  0x15   :  { %229 = vmatpush.bf16.msra.mxu1 %v357_v3  ;;  %v351_v18 = vld [vmem:[#allocation8] sm:$0xff]  ;;  %v367_v20 = vld [vmem:[%s535_s2] ss:$0 sm:$0xff]  ;;  %s265_s2 = sshll.u32 %s538_s5, 4  ;;  %s266_s2 = int_to_ptr.hbm [resolvable:$true] %s265_s2 }
  0x16   :  { %v368_v27 = vld [vmem:[%s537_s4] ss:$0 sm:$0xff] }
  0x18   :  { %147 = vmatpush.bf16.msra.mxu0 %v348_v4 }
  0x19   :  { %230 = vmatpush.bf16.msra.mxu1 %v356_v5 }
  0x1c   :  { %148 = vmatpush.bf16.msra.mxu0 %v347_v6 }
  0x1d   :  { %231 = vmatpush.bf16.msra.mxu1 %v355_v7 }
  0x20   :  { %149 = vmatpush.bf16.msra.mxu0 %v346_v8 }
  0x21   :  { %232 = vmatpush.bf16.msra.mxu1 %v354_v15 }
  0x24   :  { %150 = vmatpush.bf16.msra.mxu0 %v345_v9 }
  0x25   :  { %233 = vmatpush.bf16.msra.mxu1 %v353_v16 }
  0x28   :  { %151 = vmatpush.bf16.msra.mxu0 %v344_v10 }
  0x29   :  { %234 = vmatpush.bf16.msra.mxu1 %v352_v17 }
  0x2c   :  { %152 = vmatpush.bf16.msra.mxu0 %v343_v11 }
  0x2d   :  { %235 = vmatpush.bf16.msra.mxu1 %v351_v18 }
  0x2f   :  { %153 = vmatmul.bf16.vlgmr.msra.gmra.mxu0 %v76_v14 }
  0xac   :  { %v154_v19 = vpop.f32.mrf.mxu0 }
  0xad   :  { %v155_v21 = vadd.f32 %v367_v20, %v154_v19 }
  0xaf   :  { %v159_v24 = vmax.f32 %v155_v21, 0.0 }
  0xb4   :  { %v156_v22 = vpop.f32.mrf.mxu0 }
  0xb5   :  { %v157_v23 = vadd.f32 %v367_v20, %v156_v22 }
  0xb7   :  { %v160_v25 = vmax.f32 %v157_v23, 0.0 }
  0xb9   :  { %v161_v26 = vpack.c.bf16 %v160_v25, %v159_v24 }
  0xbb   :  { %236 = vmatmul.bf16.vlgmr.msra.gmra.mxu1 %v161_v26 }
 0x138   :  { %v237_v28 = vpop.f32.mrf.mxu1 }
 0x139   :  { %v255_v29 = vadd.f32 %v368_v27, %v237_v28 }
 0x13b   :  { %257 = vst [vmem:[#allocation9] sm:$0xff] %v255_v29 }
 0x140   :  { %v239_v30 = vpop.f32.mrf.mxu1 }
 0x141   :  { %v256_v31 = vadd.f32 %v368_v27, %v239_v30 }
 0x143   :  { %258 = vst [vmem:[#allocation9 + $0x8] sm:$0xff] %v256_v31 }
 0x144   :  { %271 = dma.vmem_to_hbm [thread:$0]  %s264_s14, 256, %s266_s2, [#allocation5], %s475_s30, %s475_s30, %s476_s6  }
 0x145   :  { %469 = dma.done.wait [#allocation5], 256  }
 0x146   :  { %470 = vsyncadd [#allocation5], 4294967040 }
 0x147   :  { %276 = vsyncpa [#allocation4], 1 }
 0x148   :  { %277 = vsyncpa [#allocation7], 1 }
 0x149   :  { %278 = vsyncpa [#allocation5], 1 }

</bundles_post_ra>
